<compile_context>
chip_gen: v6e
topology: v6e:2x2x1
jax: 0.10.0
libtpu: 0.0.40
codegen_flags: <defaults>
</compile_context>

<pallas_src>
import jax
import jax.numpy as jnp
from jax.experimental import pallas as pl
from jax.experimental.pallas import tpu as pltpu

NEG_SLOPE = 0.2       # torch_geometric GATConv default negative_slope
MASK_VAL = -1e30      # finite additive mask value (avoids -inf - -inf NaN risk)


def gatconv_kernel(x_ref, mask_ref, w_ref, acat_ref, b_ref, out_ref):
    # Per-grid-step views (leading block-batch dim squeezed by BlockSpec):
    # x_ref:    (M, F)   flattened node features of Bt graphs (M = Bt*N)   f32
    # mask_ref: (M, M)   block-diagonal additive mask: 0 edge / -1e30 else f32
    # w_ref:    (F, H)   linear weight (applied as x @ W)                  f32
    # acat_ref: (H, 2)   [a_dst | a_src] attention vectors                 f32
    # b_ref:    (1, H)   output bias                                       f32
    # out_ref:  (M, H)
    x = x_ref[...]

    # --- linear transform (single MXU call over all Bt graphs) ---
    h = jnp.dot(x, w_ref[...], preferred_element_type=jnp.float32)        # (M, H)

    # --- attention logits: one fused (M,2) MXU call, no (M,H) transpose ---
    d = jnp.dot(h, acat_ref[...], preferred_element_type=jnp.float32)     # (M, 2)
    alpha_dst = d[:, 0:1]                                                  # (M, 1)
    alpha_src = jnp.transpose(d[:, 1:2])                                   # (1, M)
    e = alpha_dst + alpha_src                                              # (M, M)
    e = jnp.where(e > 0, e, NEG_SLOPE * e)                                 # LeakyReLU(0.2)

    # --- masked softmax over neighbors j (last axis): one additive mask ---
    e = e + mask_ref[...]                                                  # kills non-edges
    e_max = jnp.max(e, axis=-1, keepdims=True)                             # (M, 1)
    p = jnp.exp(e - e_max)                                                 # masked -> 0
    denom = jnp.sum(p, axis=-1, keepdims=True)                             # (M, 1)

    # --- aggregate messages (f32 MXU, f32 acc), normalize after, add bias ---
    agg = jnp.dot(p, h, preferred_element_type=jnp.float32)                # (M, H)
    out = agg * pl.reciprocal(denom, approx=False) + b_ref[...]
    out_ref[...] = out.astype(out_ref.dtype)


def gat_forward(x, adj, w, a_src, a_dst, bias, *, num_blocks=2):
    """Batched GATConv forward.

    x:     (B, N, F) f32
    adj:   (B, N, N) bool/0-1 (self-loops included)
    w:     (F, H)    f32
    a_src: (1, H)    f32   (score contribution of the message SOURCE j)
    a_dst: (1, H)    f32   (score contribution of the message TARGET i)
    bias:  (1, H)    f32
    num_blocks: grid steps; 2 keeps both TensorCores busy on v7x and costs one
                extra ~0.35us step on single-TC v5e/v6e.
    -> (B, N, H) f32
    """
    B, N, F = x.shape
    H = w.shape[1]
    assert B % num_blocks == 0, "B must be divisible by num_blocks"
    Bt = B // num_blocks
    M = Bt * N

    # Fuse the two attention vectors into a single (H, 2) MXU operand:
    # column 0 = a_dst, column 1 = a_src.
    a_cat = jnp.concatenate([a_dst, a_src], axis=0).T                      # (H, 2)

    # Flatten Bt graphs per grid block into an M-row slab.
    x_blk = x.reshape(num_blocks, M, F)

    # Block-diagonal additive mask per grid block: (num_blocks, M, M) f32.
    # mask[s, bi*N+i, bj*N+j] = 0 if (bi == bj and adj[s*Bt+bi, i, j]) else -1e30
    adj_b = adj.reshape(num_blocks, Bt, N, N).astype(bool)
    eye_bt = jnp.eye(Bt, dtype=bool)
    blockdiag = jnp.logical_and(adj_b[:, :, :, None, :],
                                eye_bt[None, :, None, :, None])            # (nb,Bt,N,Bt,N)
    mask = jnp.where(blockdiag.reshape(num_blocks, M, M),
                     0.0, MASK_VAL).astype(jnp.float32)

    out = pl.pallas_call(
        gatconv_kernel,
        out_shape=jax.ShapeDtypeStruct((num_blocks, M, H), jnp.float32),
        grid_spec=pl.GridSpec(
            grid=(num_blocks,),
            in_specs=[
                pl.BlockSpec((None, M, F), lambda s: (s, 0, 0)),   # x slab
                pl.BlockSpec((None, M, M), lambda s: (s, 0, 0)),   # additive mask
                pl.BlockSpec((F, H), lambda s: (0, 0)),            # W (shared)
                pl.BlockSpec((H, 2), lambda s: (0, 0)),            # a_cat (shared)
                pl.BlockSpec((1, H), lambda s: (0, 0)),            # bias (shared)
            ],
            out_specs=pl.BlockSpec((None, M, H), lambda s: (s, 0, 0)),
        ),
        compiler_params=pltpu.CompilerParams(
            dimension_semantics=("parallel",)),
    )(x_blk, mask, w, a_cat, bias)

    return out.reshape(B, N, H)


def _gat_reference(x, adj, w, a_src, a_dst, bias):
    """Pure-JAX per-graph GATConv reference for correctness checking."""
    h = jnp.einsum("bnf,fh->bnh", x, w)                                    # (B,N,H)
    d_dst = jnp.einsum("bnh,h->bn", h, a_dst[0])[:, :, None]               # (B,N,1)
    d_src = jnp.einsum("bnh,h->bn", h, a_src[0])[:, None, :]               # (B,1,N)
    e = d_dst + d_src
    e = jnp.where(e > 0, e, NEG_SLOPE * e)
    e = jnp.where(adj.astype(bool), e, MASK_VAL)
    e = e - jnp.max(e, axis=-1, keepdims=True)
    p = jnp.exp(e)
    p = p / jnp.sum(p, axis=-1, keepdims=True)
    return jnp.einsum("bij,bjh->bih", p, h) + bias[None]


if __name__ == "__main__":
    # Module hyperparameters (GAT(num_features, hid_num, in_head, out_head)).
    num_features = 8
    hid_num = 32
    in_head = 4        # stored by the module but unused by conv1 (heads=1 default)
    out_head = 1       # stored by the module but unused
    N = 16             # number of graph nodes
    B = 8              # graphs batched into one pallas_call (2 grid steps)

    key = jax.random.PRNGKey(0)
    k_x, k_adj, k_w, k_as, k_ad, _ = jax.random.split(key, 6)

    # Node features.
    x = jax.random.normal(k_x, (B, N, num_features), dtype=jnp.float32)

    # Deterministic random sparse adjacency + self-loops (GATConv adds self-loops).
    rand_adj = jax.random.uniform(k_adj, (B, N, N)) < 0.25
    adj = jnp.logical_or(rand_adj, jnp.eye(N, dtype=bool)[None])

    # Deterministic parameter init (glorot-style scaling; synthetic, no checkpoint).
    w_scale = (6.0 / (num_features + hid_num)) ** 0.5
    a_scale = (6.0 / (hid_num + 1)) ** 0.5
    w = jax.random.uniform(k_w, (num_features, hid_num),
                           minval=-w_scale, maxval=w_scale, dtype=jnp.float32)
    a_src = jax.random.uniform(k_as, (1, hid_num),
                               minval=-a_scale, maxval=a_scale, dtype=jnp.float32)
    a_dst = jax.random.uniform(k_ad, (1, hid_num),
                               minval=-a_scale, maxval=a_scale, dtype=jnp.float32)
    bias = jnp.zeros((1, hid_num), dtype=jnp.float32)

    out = gat_forward(x, adj, w, a_src, a_dst, bias, num_blocks=2)
    jax.block_until_ready(out)
    assert out.shape == (B, N, hid_num)
    assert bool(jnp.all(jnp.isfinite(out)))

    ref = _gat_reference(x, adj, w, a_src, a_dst, bias)
    assert bool(jnp.allclose(out, ref, rtol=1e-4, atol=1e-4)), (
        float(jnp.max(jnp.abs(out - ref))))
    # TODO(synk): GAT.forward() in the reference module is `pass`; the kernel
    # implements the constructed GATConv(conv1) forward semantics instead.
    print("KERNEL_OK")
</pallas_src>

<mosaic_0001>
module attributes {stable_mosaic.version = 11 : i64} {
  func.func @gatconv_kernel(%arg0: i32, %arg1: memref<1x64x8xf32, #tpu.memory_space<vmem>>, %arg2: memref<1x64x64xf32, #tpu.memory_space<vmem>>, %arg3: memref<8x32xf32, #tpu.memory_space<vmem>>, %arg4: memref<32x2xf32, #tpu.memory_space<vmem>>, %arg5: memref<1x32xf32, #tpu.memory_space<vmem>>, %arg6: memref<1x64x32xf32, #tpu.memory_space<vmem>>) attributes {dimension_semantics = [#tpu.dimension_semantics<parallel>], iteration_bounds = array<i64: 2>, scalar_prefetch = 0 : i64, scratch_operands = 0 : i64, tpu.core_type = #tpu.core_type<tc>, window_params = [{transform_indices = @transform_0, window_bounds = array<i64: 1, 64, 8>}, {transform_indices = @transform_1, window_bounds = array<i64: 1, 64, 64>}, {pipeline_mode = #tpu.pipeline_mode<synchronous>, transform_indices = @transform_2, window_bounds = array<i64: 8, 32>}, {pipeline_mode = #tpu.pipeline_mode<synchronous>, transform_indices = @transform_3, window_bounds = array<i64: 32, 2>}, {pipeline_mode = #tpu.pipeline_mode<synchronous>, transform_indices = @transform_4, window_bounds = array<i64: 1, 32>}, {transform_indices = @transform_5, window_bounds = array<i64: 1, 64, 32>}]} {
    %c0 = arith.constant 0 : index
    %c0_0 = arith.constant 0 : index
    %c0_1 = arith.constant 0 : index
    %0 = vector.load %arg1[%c0, %c0_0, %c0_1] : memref<1x64x8xf32, #tpu.memory_space<vmem>>, vector<1x64x8xf32>
    %1 = vector.shape_cast %0 : vector<1x64x8xf32> to vector<64x8xf32>
    %c0_2 = arith.constant 0 : index
    %c0_3 = arith.constant 0 : index
    %2 = vector.load %arg3[%c0_2, %c0_3] : memref<8x32xf32, #tpu.memory_space<vmem>>, vector<8x32xf32>
    %cst = arith.constant dense<0.000000e+00> : vector<64x32xf32>
    %3 = tpu.matmul %1, %2, %cst {dimension_numbers = #tpu.dot_dimension_numbers<[1], [0], [0], [1], [0, 0, 1, 1], [], []>} : vector<64x8xf32>, vector<8x32xf32>, vector<64x32xf32> -> vector<64x32xf32>
    %c0_4 = arith.constant 0 : index
    %c0_5 = arith.constant 0 : index
    %4 = vector.load %arg4[%c0_4, %c0_5] : memref<32x2xf32, #tpu.memory_space<vmem>>, vector<32x2xf32>
    %cst_6 = arith.constant dense<0.000000e+00> : vector<64x2xf32>
    %5 = tpu.matmul %3, %4, %cst_6 {dimension_numbers = #tpu.dot_dimension_numbers<[1], [0], [0], [1], [0, 0, 1, 1], [], []>} : vector<64x32xf32>, vector<32x2xf32>, vector<64x2xf32> -> vector<64x2xf32>
    %6 = vector.extract_strided_slice %5 {offsets = [0, 0], sizes = [64, 1], strides = [1, 1]} : vector<64x2xf32> to vector<64x1xf32>
    %7 = vector.extract_strided_slice %5 {offsets = [0, 1], sizes = [64, 1], strides = [1, 1]} : vector<64x2xf32> to vector<64x1xf32>
    %8 = tpu.transpose %7, [1, 0] : vector<64x1xf32> -> vector<1x64xf32>
    %9 = vector.broadcast %6 : vector<64x1xf32> to vector<64x64xf32>
    %10 = vector.broadcast %8 : vector<1x64xf32> to vector<64x64xf32>
    %11 = arith.addf %9, %10 : vector<64x64xf32>
    %cst_7 = arith.constant 0.000000e+00 : f32
    %12 = vector.broadcast %cst_7 : f32 to vector<64x64xf32>
    %13 = arith.cmpf ogt, %11, %12 : vector<64x64xf32>
    %cst_8 = arith.constant 2.000000e-01 : f32
    %14 = vector.broadcast %cst_8 : f32 to vector<64x64xf32>
    %15 = arith.mulf %14, %11 : vector<64x64xf32>
    %16 = arith.select %13, %11, %15 : vector<64x64xi1>, vector<64x64xf32>
    %c0_9 = arith.constant 0 : index
    %c0_10 = arith.constant 0 : index
    %c0_11 = arith.constant 0 : index
    %17 = vector.load %arg2[%c0_9, %c0_10, %c0_11] : memref<1x64x64xf32, #tpu.memory_space<vmem>>, vector<1x64x64xf32>
    %18 = vector.shape_cast %17 : vector<1x64x64xf32> to vector<64x64xf32>
    %19 = arith.addf %16, %18 : vector<64x64xf32>
    %cst_12 = arith.constant dense<0xFF800000> : vector<64xf32>
    %20 = vector.multi_reduction <maximumf>, %19, %cst_12 [1] : vector<64x64xf32> to vector<64xf32>
    %21 = vector.shape_cast %20 : vector<64xf32> to vector<64x1xf32>
    %22 = vector.broadcast %21 : vector<64x1xf32> to vector<64x64xf32>
    %23 = arith.subf %19, %22 : vector<64x64xf32>
    %24 = math.exp %23 : vector<64x64xf32>
    %cst_13 = arith.constant dense<0.000000e+00> : vector<64xf32>
    %25 = vector.multi_reduction <add>, %24, %cst_13 [1] : vector<64x64xf32> to vector<64xf32>
    %26 = vector.shape_cast %25 : vector<64xf32> to vector<64x1xf32>
    %cst_14 = arith.constant dense<0.000000e+00> : vector<64x32xf32>
    %27 = tpu.matmul %24, %3, %cst_14 {dimension_numbers = #tpu.dot_dimension_numbers<[1], [0], [0], [1], [0, 0, 1, 1], [], []>} : vector<64x64xf32>, vector<64x32xf32>, vector<64x32xf32> -> vector<64x32xf32>
    %28 = tpu.reciprocal %26 : vector<64x1xf32> -> vector<64x1xf32>
    %29 = vector.broadcast %28 : vector<64x1xf32> to vector<64x32xf32>
    %30 = arith.mulf %27, %29 : vector<64x32xf32>
    %c0_15 = arith.constant 0 : index
    %c0_16 = arith.constant 0 : index
    %31 = vector.load %arg5[%c0_15, %c0_16] : memref<1x32xf32, #tpu.memory_space<vmem>>, vector<1x32xf32>
    %32 = vector.broadcast %31 : vector<1x32xf32> to vector<64x32xf32>
    %33 = arith.addf %30, %32 : vector<64x32xf32>
    %c0_17 = arith.constant 0 : index
    %c0_18 = arith.constant 0 : index
    %c0_19 = arith.constant 0 : index
    %34 = vector.load %arg6[%c0_17, %c0_18, %c0_19] : memref<1x64x32xf32, #tpu.memory_space<vmem>>, vector<1x64x32xf32>
    %35 = vector.shape_cast %34 : vector<1x64x32xf32> to vector<64x32xf32>
    %36 = vector.shape_cast %33 : vector<64x32xf32> to vector<1x64x32xf32>
    tpu.vector_store %arg6[%c0_17, %c0_18, %c0_19], %36 {strides = array<i32>} : memref<1x64x32xf32, #tpu.memory_space<vmem>>, vector<1x64x32xf32>,
    return
  }
  func.func @transform_0(%arg0: i32) -> (i32, i32, i32) {
    %c0_i32 = arith.constant 0 : i32
    %c0_i32_0 = arith.constant 0 : i32
    %c0_i32_1 = arith.constant 0 : i32
    return %arg0, %c0_i32, %c0_i32_0 : i32, i32, i32
  }
  func.func @transform_1(%arg0: i32) -> (i32, i32, i32) {
    %c0_i32 = arith.constant 0 : i32
    %c0_i32_0 = arith.constant 0 : i32
    %c0_i32_1 = arith.constant 0 : i32
    return %arg0, %c0_i32, %c0_i32_0 : i32, i32, i32
  }
  func.func @transform_2(%arg0: i32) -> (i32, i32) {
    %c0_i32 = arith.constant 0 : i32
    %c0_i32_0 = arith.constant 0 : i32
    %c0_i32_1 = arith.constant 0 : i32
    return %c0_i32, %c0_i32_0 : i32, i32
  }
  func.func @transform_3(%arg0: i32) -> (i32, i32) {
    %c0_i32 = arith.constant 0 : i32
    %c0_i32_0 = arith.constant 0 : i32
    %c0_i32_1 = arith.constant 0 : i32
    return %c0_i32, %c0_i32_0 : i32, i32
  }
  func.func @transform_4(%arg0: i32) -> (i32, i32) {
    %c0_i32 = arith.constant 0 : i32
    %c0_i32_0 = arith.constant 0 : i32
    %c0_i32_1 = arith.constant 0 : i32
    return %c0_i32, %c0_i32_0 : i32, i32
  }
  func.func @transform_5(%arg0: i32) -> (i32, i32, i32) {
    %c0_i32 = arith.constant 0 : i32
    %c0_i32_0 = arith.constant 0 : i32
    %c0_i32_1 = arith.constant 0 : i32
    return %arg0, %c0_i32, %c0_i32_0 : i32, i32, i32
  }
}

</mosaic_0001>

<bundles_post_ra>
// kernel: tpu_custom_call.1
= control target key start
LH: loop header
LB: loop body
LE: loop exit
PB: predicated region body
PF: predicated region fallthrough
CT: control target
= control target key end

     0   :  { %s1215_s18 = smov 0   ;;  %s1326_s0 = inlined_call_operand.vmem [shape: f32[2,64,8], index: 0, kind: input, shape index: {}]   ;;  %s1327_s1 = inlined_call_operand.vmem [shape: f32[2,64,64], index: 1, kind: input, shape index: {}]   ;;  %s1328_s2 = inlined_call_operand.vmem [shape: f32[8,32], index: 2, kind: input, shape index: {}]   ;;  %s1329_s3 = inlined_call_operand.vmem [shape: f32[32,2], index: 3, kind: input, shape index: {}]   ;;  %s1330_s4 = inlined_call_operand.vmem [shape: f32[1,32], index: 4, kind: input, shape index: {}]   ;;  %s1331_s5 = inlined_call_operand.vmem [shape: f32[2,64,32], index: 5, kind: output, shape index: {}]  }
   0x1 LB: > { %s974_s19 = sadd.s32 4294967295, %s1181_s18   ;;  %p978_p0 = scmp.ge.s32.totalorder %s1181_s18, 1  ;;  %s1181_s18 = sphi %s1215_s18, %s15_s18  }
   0x2   : > { %p197_p1 = scmp.lt.s32.totalorder %s1181_s18, 3 }
   0x4   : > { %p198_p2 = pnand %p978_p0, %p197_p1 }
   0x5   : > { %p230_p3 = scmp.lt.s32.totalorder (!%p198_p2), %s974_s19, 1  ;;  %s1184_s9 = smov (!%p198_p2), 127  }
   0x6   : > { %201 = sbr.rel (%p198_p2) target bundleno = 1041 (0x411), region = 40 }
   0xb   : > { %v253_v0 = vld [vmem:[%s1328_s2] sm:$0xff]  ;;  %v387_v1 = vld [vmem:[%s1329_s3 + $0x18] sm:$0xff]  ;;  %v386_v2 = vld [vmem:[%s1329_s3 + $0x10] sm:$0xff]  ;;  %s1333_s19 = smov (!%p230_p3, %s974_s19), 1  ;;  %vm254_vm0 = vcmask 64512   ;;  %vm388_vm1 = vcmask 261120   ;;  %v614_v40 = vlaneseq }
   0xc   : > { %1052 = vmatprep.subr.mxu0 %v253_v0  ;;  %1066 = vmatprep.subr.mxu1 %v387_v1  ;;  %s1232_s26 = sshll.u32 %s1333_s19, 6  ;;  %v385_v11 = vld [vmem:[%s1329_s3 + $0x8] sm:$0xff]  ;;  %v384_v12 = vld [vmem:[%s1329_s3] sm:$0xff]  ;;  %v1183_v21 = vmov 0   ;;  %vm666_vm4 = vcmask 523264  }
   0xd   : > { %1053 = vmatpush3.msra.mxu0 %v253_v0  ;;  %1067 = vmatpush3.msra.mxu1 %v387_v1  ;;  %s234_s29 = scalar_lea.vmem %s1326_s0, %s1232_s26  ;;  %v615_v42 = vshrl.u32 %v614_v40, 7  ;;  %s1264_s12 = scalar_lea.vmem %s1327_s1, %s1232_s26 }
   0xe   : > { %1068 = vmatprep.subr.mxu1 %v386_v2  ;;  %v245_v3 = vld [vmem:[%s234_s29] sm:$0xff]  ;;  %v246_v4 = vld [vmem:[%s234_s29 + $0x8] sm:$0xff]  ;;  %v247_v5 = vld [vmem:[%s234_s29 + $0x10] sm:$0xff]  ;;  %1141 = vset.pattern.permute.xlu0 %v1183_v21  ;;  %s1305_s17 = scalar_lea.vmem %s1331_s5, %s1232_s26 }
   0xf   : > { %1069 = vmatpush3.msra.mxu1 %v386_v2  ;;  %1054 = vmatprep.mubr.msk.f32.mxu0 %vm254_vm0, %v245_v3  ;;  %v248_v6 = vld [vmem:[%s234_s29 + $0x18] sm:$0xff]  ;;  %v249_v7 = vld [vmem:[%s234_s29 + $0x20] sm:$0xff]  ;;  %v250_v8 = vld [vmem:[%s234_s29 + $0x28] sm:$0xff]  ;;  %v616_v45 = vsub.s32 0, %v615_v42 }
  0x10   : > { %1055 = vmatmul.mubr.msk.f32.vlgmr.msra.gmra.mxu0 %vm254_vm0, %v246_v4  ;;  %v251_v9 = vld [vmem:[%s234_s29 + $0x30] sm:$0xff]  ;;  %v252_v10 = vld [vmem:[%s234_s29 + $0x38] sm:$0xff]  ;;  %1070 = vmatprep.subr.mxu1 %v385_v11  ;;  %v650_v52 = vld [vmem:[%s1264_s12] sm:$0xff] }
  0x11   : > { %1057 = vmatprep.mubr.msk.f32.mxu0 %vm254_vm0, %v247_v5  ;;  %1071 = vmatpush3.msra.mxu1 %v385_v11  ;;  %v651_v57 = vld [vmem:[%s1264_s12 + $0x8] sm:$0xff]  ;;  %v652_v1 = vld [vmem:[%s1264_s12 + $0x10] sm:$0xff] }
  0x12   : > { %1072 = vmatprep.subr.mxu1 %v384_v12  ;;  %1142 = vset.pattern.permute.xlu1 %v1183_v21 }
  0x13   : > { %1073 = vmatpush3.msra.mxu1 %v384_v12 }
  0x14   : > { %1058 = vmatmul.mubr.msk.f32.gmra.mxu0 %vm254_vm0, %v248_v6 }
  0x15   : > { %1060 = vmatprep.mubr.msk.f32.mxu0 %vm254_vm0, %v249_v7 }
  0x18   : > { %1061 = vmatmul.mubr.msk.f32.gmra.mxu0 %vm254_vm0, %v250_v8  ;;  %v653_v8 = vld [vmem:[%s1264_s12 + $0x18] sm:$0xff] }
  0x19   : > { %1063 = vmatprep.mubr.msk.f32.mxu0 %vm254_vm0, %v251_v9 }
  0x1c   : > { %1064 = vmatmul.mubr.msk.f32.gmra.mxu0 %vm254_vm0, %v252_v10 }
  0xd0   : > { %v1056_v13 = vpop.f32.mrf.mxu0 }
  0xd2   : > { %v345_v14 = vpop.f32.mrf.mxu0 }
  0xd3   : > { %1074 = vmatprep.mubr.msk.f32.mxu1 %vm388_vm1, %v345_v14 }
  0xd4   : > { %v1059_v15 = vpop.f32.mrf.mxu0  ;;  %1075 = vmatmul.mubr.msk.f32.vlgmr.msra.gmra.mxu1 %vm388_vm1, %v1056_v13 }
  0xd6   : > { %v355_v16 = vpop.f32.mrf.mxu0 }
  0xd7   : > { %1077 = vmatprep.mubr.msk.f32.mxu1 %vm388_vm1, %v355_v16 }
  0xd8   : > { %v1062_v17 = vpop.f32.mrf.mxu0  ;;  %1078 = vmatmul.mubr.msk.f32.gmra.mxu1 %vm388_vm1, %v1059_v15 }
  0xda   : > { %v365_v18 = vpop.f32.mrf.mxu0 }
  0xdb   : > { %1080 = vmatprep.mubr.msk.f32.mxu1 %vm388_vm1, %v365_v18 }
  0xdc   : > { %v1065_v19 = vpop.f32.mrf.mxu0  ;;  %1081 = vmatmul.mubr.msk.f32.gmra.mxu1 %vm388_vm1, %v1062_v17 }
  0xdd   : > { %1086 = vmatprep.subr.mxu0 %v1065_v19  ;;  %1114 = vmatprep.subr.mxu1 %v1065_v19 }
  0xde   : > { %v375_v20 = vpop.f32.mrf.mxu0  ;;  %1087 = vmatpush3.msra.mxu0 %v1065_v19  ;;  %1122 = vmatpush3.msra.mxu1 %v1065_v19 }
  0xdf   : > { %1083 = vmatprep.mubr.msk.f32.mxu1 %vm388_vm1, %v375_v20  ;;  %1088 = vmatprep.subr.mxu0 %v375_v20 }
  0xe0   : > { %1115 = vmatprep.subr.mxu1 %v375_v20  ;;  %1084 = vmatmul.mubr.msk.f32.gmra.mxu1 %vm388_vm1, %v1065_v19 }
  0xe1   : > { %1089 = vmatpush3.msra.mxu0 %v375_v20  ;;  %1123 = vmatpush3.msra.mxu1 %v375_v20  ;;  %v656_v20 = vld [vmem:[%s1264_s12 + $0x30] sm:$0xff] }
  0xe2   : > { %1090 = vmatprep.subr.mxu0 %v1062_v17  ;;  %1116 = vmatprep.subr.mxu1 %v1062_v17 }
  0xe3   : > { %1091 = vmatpush3.msra.mxu0 %v1062_v17  ;;  %1124 = vmatpush3.msra.mxu1 %v1062_v17 }
  0xe4   : > { %1092 = vmatprep.subr.mxu0 %v365_v18  ;;  %1117 = vmatprep.subr.mxu1 %v365_v18 }
  0xe5   : > { %1093 = vmatpush3.msra.mxu0 %v365_v18  ;;  %1125 = vmatpush3.msra.mxu1 %v365_v18 }
  0xe6   : > { %1094 = vmatprep.subr.mxu0 %v1059_v15  ;;  %1118 = vmatprep.subr.mxu1 %v1059_v15 }
  0xe7   : > { %1095 = vmatpush3.msra.mxu0 %v1059_v15  ;;  %1126 = vmatpush3.msra.mxu1 %v1059_v15 }
  0xe8   : > { %1096 = vmatprep.subr.mxu0 %v355_v16  ;;  %1119 = vmatprep.subr.mxu1 %v355_v16 }
  0xe9   : > { %1097 = vmatpush3.msra.mxu0 %v355_v16  ;;  %1127 = vmatpush3.msra.mxu1 %v355_v16 }
  0xea   : > { %1098 = vmatprep.subr.mxu0 %v1056_v13  ;;  %1120 = vmatprep.subr.mxu1 %v1056_v13 }
  0xeb   : > { %1099 = vmatpush3.msra.mxu0 %v1056_v13  ;;  %1128 = vmatpush3.msra.mxu1 %v1056_v13 }
  0xec   : > { %1100 = vmatprep.subr.mxu0 %v345_v14  ;;  %1121 = vmatprep.subr.mxu1 %v345_v14 }
  0xed   : > { %1101 = vmatpush3.msra.mxu0 %v345_v14  ;;  %1129 = vmatpush3.msra.mxu1 %v345_v14  ;;  %v654_v14 = vld [vmem:[%s1264_s12 + $0x20] sm:$0xff] }
 0x194   : > { %v1076_v22 = vpop.f32.mrf.mxu1 }
 0x196   : > { %v479_v23 = vpop.f32.mrf.mxu1 }
 0x197   : > { %526 = vrot.lane.b32.xlu0 %v479_v23, %s1184_s9 }
 0x198   : > { %v1079_v24 = vpop.f32.mrf.mxu1 }
 0x199   : > { %532 = vrot.lane.b32.xlu1 %v1079_v24, %s1184_s9 }
 0x19a   : > { %v489_v25 = vpop.f32.mrf.mxu1 }
 0x19b   : > { %528 = vrot.lane.b32.xlu0 %v1076_v22, %s1184_s9 }
 0x19c   : > { %v1082_v26 = vpop.f32.mrf.mxu1 }
 0x19d   : > { %530 = vrot.lane.b32.xlu1 %v489_v25, %s1184_s9 }
 0x19e   : > { %v499_v27 = vpop.f32.mrf.mxu1 }
 0x19f   : > { %534 = vrot.lane.b32.xlu0 %v499_v27, %s1184_s9 }
 0x1a0   : > { %v1085_v28 = vpop.f32.mrf.mxu1 }
 0x1a1   : > { %536 = vrot.lane.b32.xlu1 %v1082_v26, %s1184_s9 }
 0x1a2   : > { %v509_v29 = vpop.f32.mrf.mxu1 }
 0x1a3   : > { %538 = vrot.lane.b32.xlu0 %v509_v29, %s1184_s9 }
 0x1a5   : > { %540 = vrot.lane.b32.xlu1 %v1085_v28, %s1184_s9 }
 0x1a7   : > { %583 = vperm.xlu0 %1141, %v479_v23  }
 0x1a9   : > { %587 = vperm.xlu1 %1142, %v1076_v22  }
 0x1ab   : > { %595 = vperm.xlu0 %1141, %v1079_v24  }
 0x1ad   : > { %591 = vperm.xlu1 %1142, %v489_v25  }
 0x1af   : > { %611 = vperm.xlu0 %1141, %v1085_v28  }
 0x1b1   : > { %599 = vperm.xlu1 %1142, %v499_v27  }
 0x1b3   : > { %607 = vperm.xlu0 %1141, %v509_v29  }
 0x1b5   : > { %603 = vperm.xlu1 %1142, %v1082_v26   ;;  %v655_v26 = vld [vmem:[%s1264_s12 + $0x28] sm:$0xff] }
 0x209   : > { %v527_v30 = vpop.permute.xlu0 %526 }
 0x20a   : > { %550 = vxpose.xlu1.b32.start [1/8] (short) (narrow) %v527_v30, 8 }
 0x20b   : > { %v533_v31 = vpop.permute.xlu1 %532 }
 0x20d   : > { %v529_v32 = vpop.permute.xlu0 %528 }
 0x20e   : > { %551 = vxpose.xlu1.b32.cont [2/8] (short) (narrow) %v529_v32, 8 }
 0x20f   : > { %v531_v33 = vpop.permute.xlu1 %530 }
 0x211   : > { %v535_v34 = vpop.permute.xlu0 %534 }
 0x212   : > { %552 = vxpose.xlu1.b32.cont [3/8] (short) (narrow) %v531_v33, 8 }
 0x213   : > { %v537_v35 = vpop.permute.xlu1 %536 }
 0x215   : > { %v539_v36 = vpop.permute.xlu0 %538 }
 0x216   : > { %553 = vxpose.xlu1.b32.cont [4/8] (short) (narrow) %v533_v31, 8  ;;  %v657_v31 = vld [vmem:[%s1264_s12 + $0x38] sm:$0xff] }
 0x217   : > { %v541_v37 = vpop.permute.xlu1 %540 }
 0x21a   : > { %554 = vxpose.xlu1.b32.cont [5/8] (short) (narrow) %v535_v34, 8 }
 0x21e   : > { %555 = vxpose.xlu1.b32.cont [6/8] (short) (narrow) %v537_v35, 8 }
 0x222   : > { %556 = vxpose.xlu1.b32.cont [7/8] (short) (narrow) %v539_v36, 8  ;;  %v584_v43 = vpop.permute.xlu0 %583 }
 0x224   : > { %v588_v38 = vpop.permute.xlu1 %587 }
 0x226   : > { %557 = vxpose.xlu1.b32.end [8/8] (short) (narrow) %v541_v37, 8  ;;  %v596_v48 = vpop.permute.xlu0 %595 }
 0x228   : > { %v592_v39 = vpop.permute.xlu1 %591 }
 0x22a   : > { %v612_v60 = vpop.permute.xlu0 %611 }
 0x22c   : > { %v600_v41 = vpop.permute.xlu1 %599 }
 0x22e   : > { %v608_v4 = vpop.permute.xlu0 %607 }
 0x230   : > { %v604_v44 = vpop.permute.xlu1 %603 }
 0x286   : > { %v566_v46 = vpop.trf.xlu1 }
 0x287   : > { %v617_v47 = vrot.slane %v566_v46, %v616_v45 }
 0x289   : > { %v618_v49 = vadd.f32 %v617_v47, %v584_v43  ;;  %v619_v50 = vadd.f32 %v617_v47, %v588_v38  ;;  %v620_v51 = vadd.f32 %v617_v47, %v592_v39  ;;  %v621_v59 = vadd.f32 %v617_v47, %v596_v48 }
 0x28a   : > { %v622_v3 = vadd.f32 %v617_v47, %v600_v41  ;;  %v624_v10 = vadd.f32 %v617_v47, %v608_v4  ;;  %v623_v16 = vadd.f32 %v617_v47, %v604_v44  ;;  %v625_v22 = vadd.f32 %v617_v47, %v612_v60 }
 0x28b   : > { %vm626_vm2 = vcmp.gt.f32.partialorder %v618_v49, 0.0  ;;  %v634_v53 = vmul.f32 0.2, %v618_v49  ;;  %vm627_vm3 = vcmp.gt.f32.partialorder %v619_v50, 0.0  ;;  %v635_v54 = vmul.f32 0.2, %v619_v50 }
 0x28c   : > { %v636_v58 = vmul.f32 0.2, %v620_v51  ;;  %vm628_vm5 = vcmp.gt.f32.partialorder %v620_v51, 0.0  ;;  %v637_v2 = vmul.f32 0.2, %v621_v59  ;;  %vm629_vm6 = vcmp.gt.f32.partialorder %v621_v59, 0.0 }
 0x28d   : > { %v642_v55 = vsel %vm626_vm2, %v618_v49, %v634_v53  ;;  %v643_v56 = vsel %vm627_vm3, %v619_v50, %v635_v54  ;;  %v638_v9 = vmul.f32 0.2, %v622_v3  ;;  %vm630_vm7 = vcmp.gt.f32.partialorder %v622_v3, 0.0 }
 0x28e   : > { %v658_v61 = vadd.f32 %v650_v52, %v642_v55  ;;  %v659_v63 = vadd.f32 %v651_v57, %v643_v56  ;;  %v644_v0 = vsel %vm628_vm5, %v620_v51, %v636_v58  ;;  %v645_v7 = vsel %vm629_vm6, %v621_v59, %v637_v2 }
 0x28f   : > { %v660_v6 = vadd.f32 %v652_v1, %v644_v0  ;;  %v661_v12 = vadd.f32 %v653_v8, %v645_v7  ;;  %v646_v13 = vsel %vm630_vm7, %v622_v3, %v638_v9  ;;  %v640_v15 = vmul.f32 0.2, %v624_v10 }
 0x290   : > { %v667_v62 = vsel %vm666_vm4, %v658_v61, -inf  ;;  %v670_v5 = vsel %vm666_vm4, %v659_v63, -inf  ;;  %vm632_vm8 = vcmp.gt.f32.partialorder %v624_v10, 0.0  ;;  %v662_v18 = vadd.f32 %v654_v14, %v646_v13 }
 0x291   : > { %668 = vmax.xlane.f32.xlu0 %v667_v62  ;;  %v673_v11 = vsel %vm666_vm4, %v660_v6, -inf  ;;  %v676_v17 = vsel %vm666_vm4, %v661_v12, -inf  ;;  %v648_v19 = vsel %vm632_vm8, %v624_v10, %v640_v15  ;;  %v639_v21 = vmul.f32 0.2, %v623_v16 }
 0x292   : > { %vm631_vm9 = vcmp.gt.f32.partialorder %v623_v16, 0.0  ;;  %v679_v23 = vsel %vm666_vm4, %v662_v18, -inf  ;;  %v664_v24 = vadd.f32 %v656_v20, %v648_v19  ;;  %v641_v27 = vmul.f32 0.2, %v625_v22  ;;  %v1009_v19 = vld [vmem:[%s1330_s4] ss:$0 sm:$0xff] }
 0x293   : > { %v647_v25 = vsel %vm631_vm9, %v623_v16, %v639_v21  ;;  %vm633_vm10 = vcmp.gt.f32.partialorder %v625_v22, 0.0 }
 0x294   : > { %v685_v28 = vsel %vm666_vm4, %v664_v24, -inf  ;;  %v663_v29 = vadd.f32 %v655_v26, %v647_v25  ;;  %v649_v30 = vsel %vm633_vm10, %v625_v22, %v641_v27 }
 0x295   : > { %671 = vmax.xlane.f32.xlu0 %v670_v5  ;;  %v665_v33 = vadd.f32 %v657_v31, %v649_v30 }
 0x296   : > { %v682_v32 = vsel %vm666_vm4, %v663_v29, -inf }
 0x297   : > { %v688_v34 = vsel %vm666_vm4, %v665_v33, -inf }
 0x299   : > { %674 = vmax.xlane.f32.xlu0 %v673_v11 }
 0x29d   : > { %677 = vmax.xlane.f32.xlu0 %v676_v17 }
 0x2a1   : > { %680 = vmax.xlane.f32.xlu0 %v679_v23 }
 0x2a5   : > { %686 = vmax.xlane.f32.xlu0 %v685_v28 }
 0x2a9   : > { %683 = vmax.xlane.f32.xlu0 %v682_v32 }
 0x2ad   : > { %689 = vmax.xlane.f32.xlu0 %v688_v34 }
 0x31a   : > { %v669_v35 = vpop.xlane.xlu0 %668 }
 0x31b   : > { %v691_v36 = vsub.f32 %v658_v61, %v669_v35 }
 0x31d   : > { %v699_v37 = vmul.f32 1.442695, %v691_v36 }
 0x31e   : > { %v672_v38 = vpop.xlane.xlu0 %671 }
 0x31f   : > { %1143 = vpow2.f32 %v699_v37  ;;  %v692_v39 = vsub.f32 %v659_v63, %v672_v38 }
 0x321   : > { %v701_v40 = vmul.f32 1.442695, %v692_v39 }
 0x322   : > { %v675_v41 = vpop.xlane.xlu0 %674 }
 0x323   : > { %1145 = vpow2.f32 %v701_v40  ;;  %v693_v42 = vsub.f32 %v660_v6, %v675_v41 }
 0x325   : > { %v703_v43 = vmul.f32 1.442695, %v693_v42 }
 0x326   : > { %v678_v44 = vpop.xlane.xlu0 %677 }
 0x327   : > { %1147 = vpow2.f32 %v703_v43  ;;  %v694_v45 = vsub.f32 %v661_v12, %v678_v44 }
 0x329   : > { %v705_v46 = vmul.f32 1.442695, %v694_v45 }
 0x32a   : > { %v681_v47 = vpop.xlane.xlu0 %680 }
 0x32b   : > { %1149 = vpow2.f32 %v705_v46  ;;  %v695_v48 = vsub.f32 %v662_v18, %v681_v47 }
 0x32c   : > { %v1144_v49 = vpop.eup %1143 }
 0x32d   : > { %v707_v50 = vmul.f32 1.442695, %v695_v48  ;;  %1102 = vmatprep.mubr.msk.f32.mxu0 %vm666_vm4, %v1144_v49  ;;  %v715_v51 = vsel %vm666_vm4, %v1144_v49, 0.0 }
 0x32e   : > { %716 = vadd.xlane.f32.xlu0 %v715_v51  ;;  %v687_v52 = vpop.xlane.xlu0 %686 }
 0x32f   : > { %1151 = vpow2.f32 %v707_v50  ;;  %v697_v53 = vsub.f32 %v664_v24, %v687_v52 }
 0x330   : > { %v1146_v54 = vpop.eup %1145 }
 0x331   : > { %v711_v55 = vmul.f32 1.442695, %v697_v53  ;;  %1103 = vmatmul.mubr.msk.f32.vlgmr.msra.gmra.mxu0 %vm666_vm4, %v1146_v54  ;;  %v718_v56 = vsel %vm666_vm4, %v1146_v54, 0.0 }
 0x332   : > { %719 = vadd.xlane.f32.xlu0 %v718_v56  ;;  %v684_v57 = vpop.xlane.xlu0 %683 }
 0x333   : > { %1153 = vpow2.f32 %v711_v55  ;;  %v696_v58 = vsub.f32 %v663_v29, %v684_v57 }
 0x334   : > { %v1148_v59 = vpop.eup %1147 }
 0x335   : > { %v709_v60 = vmul.f32 1.442695, %v696_v58  ;;  %1105 = vmatprep.mubr.msk.f32.mxu0 %vm666_vm4, %v1148_v59  ;;  %v721_v61 = vsel %vm666_vm4, %v1148_v59, 0.0 }
 0x336   : > { %722 = vadd.xlane.f32.xlu1 %v721_v61  ;;  %v690_v62 = vpop.xlane.xlu0 %689 }
 0x337   : > { %1155 = vpow2.f32 %v709_v60  ;;  %v698_v63 = vsub.f32 %v665_v33, %v690_v62 }
 0x338   : > { %v1150_v0 = vpop.eup %1149 }
 0x339   : > { %v713_v1 = vmul.f32 1.442695, %v698_v63  ;;  %1106 = vmatmul.mubr.msk.f32.gmra.mxu0 %vm666_vm4, %v1150_v0  ;;  %v724_v2 = vsel %vm666_vm4, %v1150_v0, 0.0 }
 0x33a   : > { %725 = vadd.xlane.f32.xlu0 %v724_v2 }
 0x33b   : > { %1157 = vpow2.f32 %v713_v1 }
 0x33c   : > { %v1152_v3 = vpop.eup %1151 }
 0x33d   : > { %1108 = vmatprep.mubr.msk.f32.mxu0 %vm666_vm4, %v1152_v3  ;;  %v727_v4 = vsel %vm666_vm4, %v1152_v3, 0.0 }
 0x33e   : > { %728 = vadd.xlane.f32.xlu0 %v727_v4 }
 0x340   : > { %v1154_v5 = vpop.eup %1153 }
 0x341   : > { %1111 = vmatprep.mubr.msk.f32.mxu1 %vm666_vm4, %v1154_v5  ;;  %v733_v9 = vsel %vm666_vm4, %v1154_v5, 0.0 }
 0x344   : > { %v1156_v6 = vpop.eup %1155 }
 0x345   : > { %1109 = vmatmul.mubr.msk.f32.gmra.mxu0 %vm666_vm4, %v1156_v6  ;;  %v730_v7 = vsel %vm666_vm4, %v1156_v6, 0.0 }
 0x346   : > { %731 = vadd.xlane.f32.xlu0 %v730_v7 }
 0x348   : > { %v1158_v8 = vpop.eup %1157 }
 0x349   : > { %1112 = vmatmul.mubr.msk.f32.vlgmr.msra.gmra.mxu1 %vm666_vm4, %v1158_v8  ;;  %v736_v10 = vsel %vm666_vm4, %v1158_v8, 0.0 }
 0x34a   : > { %734 = vadd.xlane.f32.xlu0 %v733_v9 }
 0x34e   : > { %737 = vadd.xlane.f32.xlu0 %v736_v10 }
 0x3b7   : > { %v717_v11 = vpop.xlane.xlu0 %716 }
 0x3bb   : > { %v720_v12 = vpop.xlane.xlu0 %719 }
 0x3bc   : > { %1159 = vrcp.f32 %v720_v12 }
 0x3bd   : > { %1161 = vrcp.f32 %v717_v11 }
 0x3bf   : > { %v723_v15 = vpop.xlane.xlu1 %722 }
 0x3c3   : > { %v726_v13 = vpop.xlane.xlu0 %725 }
 0x3c4   : > { %1163 = vrcp.f32 %v726_v13 }
 0x3c5   : > { %1165 = vrcp.f32 %v723_v15 }
 0x3c7   : > { %v729_v14 = vpop.xlane.xlu0 %728 }
 0x3c9   : > { %v1160_v17 = vpop.eup %1159 }
 0x3ca   : > { %v1162_v21 = vpop.eup %1161 }
 0x3cf   : > { %v732_v16 = vpop.xlane.xlu0 %731 }
 0x3d0   : > { %1167 = vrcp.f32 %v732_v16 }
 0x3d1   : > { %v1164_v27 = vpop.eup %1163  ;;  %1169 = vrcp.f32 %v729_v14 }
 0x3d2   : > { %v1166_v31 = vpop.eup %1165 }
 0x3d3   : > { %v735_v22 = vpop.xlane.xlu0 %734 }
 0x3d7   : > { %v738_v28 = vpop.xlane.xlu0 %737 }
 0x3d8   : > { %1171 = vrcp.f32 %v738_v28 }
 0x3d9   : > { %1173 = vrcp.f32 %v735_v22 }
 0x3dd   : > { %v1168_v36 = vpop.eup %1167 }
 0x3de   : > { %v1170_v39 = vpop.eup %1169 }
 0x3e5   : > { %v1172_v43 = vpop.eup %1171 }
 0x3e6   : > { %v1174_v47 = vpop.eup %1173 }
 0x3f1   : > { %v1104_v18 = vpop.f32.mrf.mxu0 }
 0x3f2   : > { %v877_v20 = vmul.f32 %v1160_v17, %v1104_v18 }
 0x3f3   : > { %v829_v23 = vpop.f32.mrf.mxu0 }
 0x3f4   : > { %v892_v24 = vadd.f32 %v1009_v19, %v877_v20  ;;  %v876_v25 = vmul.f32 %v1162_v21, %v829_v23 }
 0x3f6   : > { %900 = vst.msk [vmem:[%s1305_s17 + $0x8] sm:$0xff] %vm388_vm1, %v892_v24  ;;  %v891_v26 = vadd.f32 %v1009_v19, %v876_v25 }
 0x3f8   : > { %899 = vst.msk [vmem:[%s1305_s17] sm:$0xff] %vm388_vm1, %v891_v26 }
 0x3f9   : > { %v1107_v29 = vpop.f32.mrf.mxu0 }
 0x3fa   : > { %v879_v30 = vmul.f32 %v1164_v27, %v1107_v29 }
 0x3fb   : > { %v839_v32 = vpop.f32.mrf.mxu0 }
 0x3fc   : > { %v894_v33 = vadd.f32 %v1009_v19, %v879_v30  ;;  %v878_v34 = vmul.f32 %v1166_v31, %v839_v32 }
 0x3fe   : > { %902 = vst.msk [vmem:[%s1305_s17 + $0x18] sm:$0xff] %vm388_vm1, %v894_v33  ;;  %v893_v35 = vadd.f32 %v1009_v19, %v878_v34 }
 0x400   : > { %901 = vst.msk [vmem:[%s1305_s17 + $0x10] sm:$0xff] %vm388_vm1, %v893_v35 }
 0x405   : > { %v1110_v37 = vpop.f32.mrf.mxu0 }
 0x406   : > { %v881_v38 = vmul.f32 %v1168_v36, %v1110_v37 }
 0x407   : > { %v849_v40 = vpop.f32.mrf.mxu0 }
 0x408   : > { %v896_v41 = vadd.f32 %v1009_v19, %v881_v38  ;;  %v880_v42 = vmul.f32 %v1170_v39, %v849_v40 }
 0x409   : > { %v1113_v44 = vpop.f32.mrf.mxu1 }
 0x40a   : > { %904 = vst.msk [vmem:[%s1305_s17 + $0x28] sm:$0xff] %vm388_vm1, %v896_v41  ;;  %v895_v45 = vadd.f32 %v1009_v19, %v880_v42  ;;  %v883_v46 = vmul.f32 %v1172_v43, %v1113_v44 }
 0x40b   : > { %v859_v48 = vpop.f32.mrf.mxu1 }
 0x40c   : > { %903 = vst.msk [vmem:[%s1305_s17 + $0x20] sm:$0xff] %vm388_vm1, %v895_v45  ;;  %v898_v49 = vadd.f32 %v1009_v19, %v883_v46  ;;  %v882_v50 = vmul.f32 %v1174_v47, %v859_v48 }
 0x40e   : > { %906 = vst.msk [vmem:[%s1305_s17 + $0x38] sm:$0xff] %vm388_vm1, %v898_v49  ;;  %v897_v51 = vadd.f32 %v1009_v19, %v882_v50 }
 0x410   : > { %905 = vst.msk [vmem:[%s1305_s17 + $0x30] sm:$0xff] %vm388_vm1, %v897_v51 }
 0x411 PF: > { %s15_s18 = sadd.s32 1, %s1181_s18  }
 0x412   : > { %p12_p4 = scmp.ge.s32.totalorder %s15_s18, 4  }
 0x414   :  { %14 = sbr.rel (!%p12_p4) target bundleno = 1 (0x1), region = 73 }

</bundles_post_ra>
